<compile_context>
chip_gen: v6e
topology: v6e:2x2x1
jax: 0.10.0
libtpu: 0.0.40
codegen_flags: <defaults>
</compile_context>

<pallas_src>
import jax
import jax.numpy as jnp
from jax.experimental import pallas as pl
from jax.experimental.pallas import tpu as pltpu

_LANES = 128
_DEFAULT_MAX_ROWS = 512  # 512 rows * 128 lanes * 4 B * Cin(~4) ~= 1 MiB input block


# ---------------------------------------------------------------------------
# Kernels
# ---------------------------------------------------------------------------

def _in_conv_kernel(w_ref, x_ref, o_ref):
    """Bias-free 1x1 conv as a VPU weighted sum.

    w_ref: SMEM (Cout*Cin,) f32 weights (scalar reads).
    x_ref: VMEM (Cin, R, 128) input block.
    o_ref: VMEM (Cout, R, 128) output block.
    """
    cin = x_ref.shape[0]
    cout = o_ref.shape[0]
    for o in range(cout):
        acc = w_ref[o * cin] * x_ref[0].astype(jnp.float32)
        for c in range(1, cin):
            acc = acc + w_ref[o * cin + c] * x_ref[c].astype(jnp.float32)
        o_ref[o] = acc.astype(o_ref.dtype)


def _replicate_kernel(x_ref, o_ref):
    """nin == 1: copy the single input channel into every output channel."""
    x = x_ref[...]  # (1, R, 128)
    o_ref[...] = jnp.broadcast_to(x, o_ref.shape)


# ---------------------------------------------------------------------------
# Layout helpers
# ---------------------------------------------------------------------------

def _to_row_major(x):
    """(N, C, H, W) -> (N, C, R, 128); pads the flattened HW axis to 128 lanes.

    For HW already a multiple of 128 (typical segmentation shapes) the pad and
    reshape are metadata-only (no extra HBM traffic)."""
    n, c, h, w = x.shape
    hw = h * w
    hw_pad = pl.cdiv(hw, _LANES) * _LANES
    x = x.reshape(n, c, hw)
    if hw_pad != hw:
        x = jnp.pad(x, ((0, 0), (0, 0), (0, hw_pad - hw)))
    return x.reshape(n, c, hw_pad // _LANES, _LANES)


def _from_row_major(y, h, w):
    """(N, C, R, 128) -> (N, C, H, W)."""
    n, c, r, l = y.shape
    return y.reshape(n, c, r * l)[:, :, : h * w].reshape(n, c, h, w)


def _row_tile(r_total, max_rows):
    if r_total <= max_rows:
        return r_total  # block == full dim: always legal, single row tile
    # Multiple of 8 sublanes; a ragged last tile is masked by Pallas (OOB
    # writes dropped), and the op is elementwise over rows so this is safe.
    return max_rows


# ---------------------------------------------------------------------------
# Wrappers
# ---------------------------------------------------------------------------

def in_conv_1x1(x, w, *, max_rows_per_block=_DEFAULT_MAX_ROWS):
    """Bias-free 1x1 conv: x (N, Cin, H, W), w (Cout, Cin) -> (N, Cout, H, W)."""
    n, cin, h, wd = x.shape
    cout = w.shape[0]
    xr = _to_row_major(x)
    r_total = xr.shape[2]
    max_rows = max(8, (int(max_rows_per_block) // 8) * 8)
    rt = _row_tile(r_total, max_rows)
    grid = (n, pl.cdiv(r_total, rt))

    w_flat = w.reshape(-1).astype(jnp.float32)

    out = pl.pallas_call(
        _in_conv_kernel,
        out_shape=jax.ShapeDtypeStruct((n, cout, r_total, _LANES), x.dtype),
        grid_spec=pltpu.PrefetchScalarGridSpec(
            num_scalar_prefetch=0,
            grid=grid,
            in_specs=[
                # (Cout*Cin,) weights: whole array in SMEM, read as scalars.
                pl.BlockSpec(memory_space=pltpu.MemorySpace.SMEM),
                pl.BlockSpec((pl.Squeezed(), cin, rt, _LANES),
                             lambda b, r: (b, 0, r, 0)),
            ],
            out_specs=pl.BlockSpec((pl.Squeezed(), cout, rt, _LANES),
                                   lambda b, r: (b, 0, r, 0)),
        ),
        compiler_params=pltpu.CompilerParams(
            dimension_semantics=("parallel", "parallel"),
            vmem_limit_bytes=32 * 1024 * 1024,
        ),
    )(w_flat, xr)
    return _from_row_major(out, h, wd)


def replicate_to_3(x, *, max_rows_per_block=_DEFAULT_MAX_ROWS):
    """nin == 1 path: write channel 0 into 3 output channels.

    NOTE: this materializes 3x the input bytes purely to satisfy the layer API;
    folding the replication into the backbone's first conv would remove this
    HBM traffic entirely.
    """
    n, _, h, wd = x.shape
    xr = _to_row_major(x[:, :1])
    r_total = xr.shape[2]
    max_rows = max(8, (int(max_rows_per_block) // 8) * 8)
    rt = _row_tile(r_total, max_rows)
    grid = (n, pl.cdiv(r_total, rt))

    out = pl.pallas_call(
        _replicate_kernel,
        out_shape=jax.ShapeDtypeStruct((n, 3, r_total, _LANES), x.dtype),
        grid_spec=pltpu.PrefetchScalarGridSpec(
            num_scalar_prefetch=0,
            grid=grid,
            in_specs=[pl.BlockSpec((pl.Squeezed(), 1, rt, _LANES),
                                   lambda b, r: (b, 0, r, 0))],
            out_specs=pl.BlockSpec((pl.Squeezed(), 3, rt, _LANES),
                                   lambda b, r: (b, 0, r, 0)),
        ),
        compiler_params=pltpu.CompilerParams(
            dimension_semantics=("parallel", "parallel"),
            vmem_limit_bytes=32 * 1024 * 1024,
        ),
    )(xr)
    return _from_row_major(out, h, wd)


# ---------------------------------------------------------------------------
# Module
# ---------------------------------------------------------------------------

class MEDSegPallas:
    """JAX/Pallas equivalent of MEDSeg.forward's channel-adaptation stage."""

    def __init__(self, nin=3, nout=3, apply_sigmoid=False, key=None):
        self.nin = nin
        self.nout = nout
        self.in_conv_w = None
        if nin not in (1, 3):
            # nn.Conv2d(nin, 3, kernel_size=1, bias=False) -> weight (3, nin, 1, 1),
            # stored here as (3, nin).  PyTorch default init: U(-1/sqrt(fan_in), +).
            key = jax.random.PRNGKey(42) if key is None else key
            bound = 1.0 / float(nin) ** 0.5
            self.in_conv_w = jax.random.uniform(
                key, (3, nin), minval=-bound, maxval=bound, dtype=jnp.float32)
        print(f"MEDSeg initialized. nin: {nin}, nout: {nout}, "
              f"apply_sigmoid: {apply_sigmoid}")

    def __call__(self, x):
        if self.nin == 1:
            x = replicate_to_3(x)
        elif self.nin == 3:
            pass
        else:
            x = in_conv_1x1(x, self.in_conv_w)
        # TODO(synk): EfficientDetForSemanticSegmentation backbone is not defined in
        # the reference module source, so the channel-adapted tensor is returned.
        return x


# ---------------------------------------------------------------------------
# Main
# ---------------------------------------------------------------------------

if __name__ == "__main__":
    key = jax.random.PRNGKey(0)
    k_a, k_b, k_c = jax.random.split(key, 3)

    # nin = 4 exercises the 1x1-conv hot path (single row-tile per batch elem).
    x = jax.random.normal(k_a, (2, 4, 16, 16), dtype=jnp.float32)
    model = MEDSegPallas(nin=4, nout=3)
    out = jax.block_until_ready(model(x))
    ref = jnp.einsum("oc,nchw->nohw", model.in_conv_w, x)
    assert out.shape == (2, 3, 16, 16)
    assert jnp.allclose(out, ref, atol=1e-5, rtol=1e-5)

    # Same conv, forced onto the multi-tile (batch x row-tile) grid path.
    x_big = jax.random.normal(k_b, (2, 4, 32, 64), dtype=jnp.float32)  # 16 rows
    out_big = jax.block_until_ready(
        in_conv_1x1(x_big, model.in_conv_w, max_rows_per_block=8))
    ref_big = jnp.einsum("oc,nchw->nohw", model.in_conv_w, x_big)
    assert out_big.shape == (2, 3, 32, 64)
    assert jnp.allclose(out_big, ref_big, atol=1e-5, rtol=1e-5)

    # nin = 1 exercises the channel-replication path.
    x1 = jax.random.normal(k_c, (2, 1, 16, 16), dtype=jnp.float32)
    model1 = MEDSegPallas(nin=1, nout=3)
    out1 = jax.block_until_ready(model1(x1))
    ref1 = jnp.broadcast_to(x1[:, :1], (2, 3, 16, 16))
    assert out1.shape == (2, 3, 16, 16)
    assert jnp.allclose(out1, ref1)

    print("KERNEL_OK")
</pallas_src>

<mosaic_0001>
module attributes {stable_mosaic.version = 11 : i64} {
  func.func @_in_conv_kernel(%arg0: i32, %arg1: i32, %arg2: memref<12xf32, #tpu.memory_space<smem>>, %arg3: memref<1x4x2x128xf32, #tpu.memory_space<vmem>>, %arg4: memref<1x3x2x128xf32, #tpu.memory_space<vmem>>) attributes {dimension_semantics = [#tpu.dimension_semantics<parallel>, #tpu.dimension_semantics<parallel>], iteration_bounds = array<i64: 2, 1>, scalar_prefetch = 0 : i64, scratch_operands = 0 : i64, tpu.core_type = #tpu.core_type<tc>, window_params = [{transform_indices = @transform_0, window_bounds = array<i64: 12>}, {transform_indices = @transform_1, window_bounds = array<i64: 1, 4, 2, 128>}, {transform_indices = @transform_2, window_bounds = array<i64: 1, 3, 2, 128>}]} {
    %c0 = arith.constant 0 : index
    %0 = memref.load %arg2[%c0] : memref<12xf32, #tpu.memory_space<smem>>
    %c0_0 = arith.constant 0 : index
    %c0_1 = arith.constant 0 : index
    %c0_2 = arith.constant 0 : index
    %c0_3 = arith.constant 0 : index
    %1 = vector.load %arg3[%c0_0, %c0_1, %c0_2, %c0_3] : memref<1x4x2x128xf32, #tpu.memory_space<vmem>>, vector<1x1x2x128xf32>
    %2 = vector.shape_cast %1 : vector<1x1x2x128xf32> to vector<2x128xf32>
    %3 = vector.broadcast %0 : f32 to vector<2x128xf32>
    %4 = arith.mulf %3, %2 : vector<2x128xf32>
    %c1 = arith.constant 1 : index
    %5 = memref.load %arg2[%c1] : memref<12xf32, #tpu.memory_space<smem>>
    %c0_4 = arith.constant 0 : index
    %c1_5 = arith.constant 1 : index
    %c0_6 = arith.constant 0 : index
    %c0_7 = arith.constant 0 : index
    %6 = vector.load %arg3[%c0_4, %c1_5, %c0_6, %c0_7] : memref<1x4x2x128xf32, #tpu.memory_space<vmem>>, vector<1x1x2x128xf32>
    %7 = vector.shape_cast %6 : vector<1x1x2x128xf32> to vector<2x128xf32>
    %8 = vector.broadcast %5 : f32 to vector<2x128xf32>
    %9 = arith.mulf %8, %7 : vector<2x128xf32>
    %10 = arith.addf %4, %9 : vector<2x128xf32>
    %c2 = arith.constant 2 : index
    %11 = memref.load %arg2[%c2] : memref<12xf32, #tpu.memory_space<smem>>
    %c0_8 = arith.constant 0 : index
    %c2_9 = arith.constant 2 : index
    %c0_10 = arith.constant 0 : index
    %c0_11 = arith.constant 0 : index
    %12 = vector.load %arg3[%c0_8, %c2_9, %c0_10, %c0_11] : memref<1x4x2x128xf32, #tpu.memory_space<vmem>>, vector<1x1x2x128xf32>
    %13 = vector.shape_cast %12 : vector<1x1x2x128xf32> to vector<2x128xf32>
    %14 = vector.broadcast %11 : f32 to vector<2x128xf32>
    %15 = arith.mulf %14, %13 : vector<2x128xf32>
    %16 = arith.addf %10, %15 : vector<2x128xf32>
    %c3 = arith.constant 3 : index
    %17 = memref.load %arg2[%c3] : memref<12xf32, #tpu.memory_space<smem>>
    %c0_12 = arith.constant 0 : index
    %c3_13 = arith.constant 3 : index
    %c0_14 = arith.constant 0 : index
    %c0_15 = arith.constant 0 : index
    %18 = vector.load %arg3[%c0_12, %c3_13, %c0_14, %c0_15] : memref<1x4x2x128xf32, #tpu.memory_space<vmem>>, vector<1x1x2x128xf32>
    %19 = vector.shape_cast %18 : vector<1x1x2x128xf32> to vector<2x128xf32>
    %20 = vector.broadcast %17 : f32 to vector<2x128xf32>
    %21 = arith.mulf %20, %19 : vector<2x128xf32>
    %22 = arith.addf %16, %21 : vector<2x128xf32>
    %c0_16 = arith.constant 0 : index
    %c0_17 = arith.constant 0 : index
    %c0_18 = arith.constant 0 : index
    %c0_19 = arith.constant 0 : index
    %23 = vector.load %arg4[%c0_16, %c0_17, %c0_18, %c0_19] : memref<1x3x2x128xf32, #tpu.memory_space<vmem>>, vector<1x1x2x128xf32>
    %24 = vector.shape_cast %23 : vector<1x1x2x128xf32> to vector<2x128xf32>
    %25 = vector.shape_cast %22 : vector<2x128xf32> to vector<1x1x2x128xf32>
    tpu.vector_store %arg4[%c0_16, %c0_17, %c0_18, %c0_19], %25 {strides = array<i32>} : memref<1x3x2x128xf32, #tpu.memory_space<vmem>>, vector<1x1x2x128xf32>,
    %c4 = arith.constant 4 : index
    %26 = memref.load %arg2[%c4] : memref<12xf32, #tpu.memory_space<smem>>
    %c0_20 = arith.constant 0 : index
    %c0_21 = arith.constant 0 : index
    %c0_22 = arith.constant 0 : index
    %c0_23 = arith.constant 0 : index
    %27 = vector.load %arg3[%c0_20, %c0_21, %c0_22, %c0_23] : memref<1x4x2x128xf32, #tpu.memory_space<vmem>>, vector<1x1x2x128xf32>
    %28 = vector.shape_cast %27 : vector<1x1x2x128xf32> to vector<2x128xf32>
    %29 = vector.broadcast %26 : f32 to vector<2x128xf32>
    %30 = arith.mulf %29, %28 : vector<2x128xf32>
    %c5 = arith.constant 5 : index
    %31 = memref.load %arg2[%c5] : memref<12xf32, #tpu.memory_space<smem>>
    %c0_24 = arith.constant 0 : index
    %c1_25 = arith.constant 1 : index
    %c0_26 = arith.constant 0 : index
    %c0_27 = arith.constant 0 : index
    %32 = vector.load %arg3[%c0_24, %c1_25, %c0_26, %c0_27] : memref<1x4x2x128xf32, #tpu.memory_space<vmem>>, vector<1x1x2x128xf32>
    %33 = vector.shape_cast %32 : vector<1x1x2x128xf32> to vector<2x128xf32>
    %34 = vector.broadcast %31 : f32 to vector<2x128xf32>
    %35 = arith.mulf %34, %33 : vector<2x128xf32>
    %36 = arith.addf %30, %35 : vector<2x128xf32>
    %c6 = arith.constant 6 : index
    %37 = memref.load %arg2[%c6] : memref<12xf32, #tpu.memory_space<smem>>
    %c0_28 = arith.constant 0 : index
    %c2_29 = arith.constant 2 : index
    %c0_30 = arith.constant 0 : index
    %c0_31 = arith.constant 0 : index
    %38 = vector.load %arg3[%c0_28, %c2_29, %c0_30, %c0_31] : memref<1x4x2x128xf32, #tpu.memory_space<vmem>>, vector<1x1x2x128xf32>
    %39 = vector.shape_cast %38 : vector<1x1x2x128xf32> to vector<2x128xf32>
    %40 = vector.broadcast %37 : f32 to vector<2x128xf32>
    %41 = arith.mulf %40, %39 : vector<2x128xf32>
    %42 = arith.addf %36, %41 : vector<2x128xf32>
    %c7 = arith.constant 7 : index
    %43 = memref.load %arg2[%c7] : memref<12xf32, #tpu.memory_space<smem>>
    %c0_32 = arith.constant 0 : index
    %c3_33 = arith.constant 3 : index
    %c0_34 = arith.constant 0 : index
    %c0_35 = arith.constant 0 : index
    %44 = vector.load %arg3[%c0_32, %c3_33, %c0_34, %c0_35] : memref<1x4x2x128xf32, #tpu.memory_space<vmem>>, vector<1x1x2x128xf32>
    %45 = vector.shape_cast %44 : vector<1x1x2x128xf32> to vector<2x128xf32>
    %46 = vector.broadcast %43 : f32 to vector<2x128xf32>
    %47 = arith.mulf %46, %45 : vector<2x128xf32>
    %48 = arith.addf %42, %47 : vector<2x128xf32>
    %c0_36 = arith.constant 0 : index
    %c1_37 = arith.constant 1 : index
    %c0_38 = arith.constant 0 : index
    %c0_39 = arith.constant 0 : index
    %49 = vector.load %arg4[%c0_36, %c1_37, %c0_38, %c0_39] : memref<1x3x2x128xf32, #tpu.memory_space<vmem>>, vector<1x1x2x128xf32>
    %50 = vector.shape_cast %49 : vector<1x1x2x128xf32> to vector<2x128xf32>
    %51 = vector.shape_cast %48 : vector<2x128xf32> to vector<1x1x2x128xf32>
    tpu.vector_store %arg4[%c0_36, %c1_37, %c0_38, %c0_39], %51 {strides = array<i32>} : memref<1x3x2x128xf32, #tpu.memory_space<vmem>>, vector<1x1x2x128xf32>,
    %c8 = arith.constant 8 : index
    %52 = memref.load %arg2[%c8] : memref<12xf32, #tpu.memory_space<smem>>
    %c0_40 = arith.constant 0 : index
    %c0_41 = arith.constant 0 : index
    %c0_42 = arith.constant 0 : index
    %c0_43 = arith.constant 0 : index
    %53 = vector.load %arg3[%c0_40, %c0_41, %c0_42, %c0_43] : memref<1x4x2x128xf32, #tpu.memory_space<vmem>>, vector<1x1x2x128xf32>
    %54 = vector.shape_cast %53 : vector<1x1x2x128xf32> to vector<2x128xf32>
    %55 = vector.broadcast %52 : f32 to vector<2x128xf32>
    %56 = arith.mulf %55, %54 : vector<2x128xf32>
    %c9 = arith.constant 9 : index
    %57 = memref.load %arg2[%c9] : memref<12xf32, #tpu.memory_space<smem>>
    %c0_44 = arith.constant 0 : index
    %c1_45 = arith.constant 1 : index
    %c0_46 = arith.constant 0 : index
    %c0_47 = arith.constant 0 : index
    %58 = vector.load %arg3[%c0_44, %c1_45, %c0_46, %c0_47] : memref<1x4x2x128xf32, #tpu.memory_space<vmem>>, vector<1x1x2x128xf32>
    %59 = vector.shape_cast %58 : vector<1x1x2x128xf32> to vector<2x128xf32>
    %60 = vector.broadcast %57 : f32 to vector<2x128xf32>
    %61 = arith.mulf %60, %59 : vector<2x128xf32>
    %62 = arith.addf %56, %61 : vector<2x128xf32>
    %c10 = arith.constant 10 : index
    %63 = memref.load %arg2[%c10] : memref<12xf32, #tpu.memory_space<smem>>
    %c0_48 = arith.constant 0 : index
    %c2_49 = arith.constant 2 : index
    %c0_50 = arith.constant 0 : index
    %c0_51 = arith.constant 0 : index
    %64 = vector.load %arg3[%c0_48, %c2_49, %c0_50, %c0_51] : memref<1x4x2x128xf32, #tpu.memory_space<vmem>>, vector<1x1x2x128xf32>
    %65 = vector.shape_cast %64 : vector<1x1x2x128xf32> to vector<2x128xf32>
    %66 = vector.broadcast %63 : f32 to vector<2x128xf32>
    %67 = arith.mulf %66, %65 : vector<2x128xf32>
    %68 = arith.addf %62, %67 : vector<2x128xf32>
    %c11 = arith.constant 11 : index
    %69 = memref.load %arg2[%c11] : memref<12xf32, #tpu.memory_space<smem>>
    %c0_52 = arith.constant 0 : index
    %c3_53 = arith.constant 3 : index
    %c0_54 = arith.constant 0 : index
    %c0_55 = arith.constant 0 : index
    %70 = vector.load %arg3[%c0_52, %c3_53, %c0_54, %c0_55] : memref<1x4x2x128xf32, #tpu.memory_space<vmem>>, vector<1x1x2x128xf32>
    %71 = vector.shape_cast %70 : vector<1x1x2x128xf32> to vector<2x128xf32>
    %72 = vector.broadcast %69 : f32 to vector<2x128xf32>
    %73 = arith.mulf %72, %71 : vector<2x128xf32>
    %74 = arith.addf %68, %73 : vector<2x128xf32>
    %c0_56 = arith.constant 0 : index
    %c2_57 = arith.constant 2 : index
    %c0_58 = arith.constant 0 : index
    %c0_59 = arith.constant 0 : index
    %75 = vector.load %arg4[%c0_56, %c2_57, %c0_58, %c0_59] : memref<1x3x2x128xf32, #tpu.memory_space<vmem>>, vector<1x1x2x128xf32>
    %76 = vector.shape_cast %75 : vector<1x1x2x128xf32> to vector<2x128xf32>
    %77 = vector.shape_cast %74 : vector<2x128xf32> to vector<1x1x2x128xf32>
    tpu.vector_store %arg4[%c0_56, %c2_57, %c0_58, %c0_59], %77 {strides = array<i32>} : memref<1x3x2x128xf32, #tpu.memory_space<vmem>>, vector<1x1x2x128xf32>,
    return
  }
  func.func @transform_0(%arg0: i32, %arg1: i32) -> i32 {
    %c0_i32 = arith.constant 0 : i32
    %c0_i32_0 = arith.constant 0 : i32
    return %c0_i32 : i32
  }
  func.func @transform_1(%arg0: i32, %arg1: i32) -> (i32, i32, i32, i32) {
    %c0_i32 = arith.constant 0 : i32
    %c0_i32_0 = arith.constant 0 : i32
    %c0_i32_1 = arith.constant 0 : i32
    return %arg0, %c0_i32, %arg1, %c0_i32_0 : i32, i32, i32, i32
  }
  func.func @transform_2(%arg0: i32, %arg1: i32) -> (i32, i32, i32, i32) {
    %c0_i32 = arith.constant 0 : i32
    %c0_i32_0 = arith.constant 0 : i32
    %c0_i32_1 = arith.constant 0 : i32
    return %arg0, %c0_i32, %arg1, %c0_i32_0 : i32, i32, i32, i32
  }
}

</mosaic_0001>

<bundles_post_ra>
// kernel: tpu_custom_call.1
= control target key start
LH: loop header
LB: loop body
LE: loop exit
PB: predicated region body
PF: predicated region fallthrough
CT: control target
= control target key end

     0   :  { %s809_s0 = inlined_call_operand.hbm [shape: f32[12], index: 0, kind: input, shape index: {}]   ;;  %s810_s1 = inlined_call_operand.hbm [shape: f32[2,4,2,128], index: 1, kind: input, shape index: {}]   ;;  %s811_s2 = inlined_call_operand.hbm [shape: f32[2,3,2,128], index: 2, kind: output, shape index: {}]  }
   0x1   :  { %812 = sst [smem:[#allocation11_spill]] %s809_s0 }
   0x2   :  { %7 = vsyncpa [#allocation5], 0 }
   0x3   :  { %8 = vsyncpa [#allocation3], 0 }
   0x4   :  { %10 = vsyncpa [#allocation3 + $0x1], 0 }
   0x5   :  { %11 = vsyncpa [#allocation4], 0 }
   0x6   :  { %13 = vsyncpa [#allocation4 + $0x1], 0  ;;  %s631_s9 = smov 0   ;;  %s633_s10 = smov 0  }
   0x7   :  { %s635_s11 = smov 0   ;;  %s637_s12 = smov 0  }
   0x8   :  { %s639_s13 = smov 0   ;;  %s641_s14 = smov 0  }
   0x9 LB: > { %s368_s15 = sadd.s32 4294967295, %s607_s14   ;;  %s369_s16 = sadd.s32 4294967294, %s607_s14   ;;  %s607_s14 = sphi %s641_s14, %s19_s14   ;;  %s603_s13 = sphi %s639_s13, %s826_s13   ;;  %s599_s12 = sphi %s637_s12, %s825_s12   ;;  %s595_s11 = sphi %s635_s11, %s824_s11   ;;  %s591_s10 = sphi %s633_s10, %s823_s10   ;;  %s587_s9 = sphi %s631_s9, %s822_s9  }
   0xa   : > { %s61_s17 = sadd.s32 1, %s595_s11  ;;  %p68_p0 = scmp.ne.s32.totalorder %s595_s11, %s591_s10 }
   0xb   : > { %p69_p1 = scmp.eq.s32.totalorder %s607_s14, 0  ;;  %p74_p2 = scmp.ne.s32.totalorder %s591_s10, %s587_s9 }
   0xc   : > { %p669_p3 = scmp.eq.s32.totalorder %s368_s15, 0  ;;  %p100_p4 = scmp.eq.s32.totalorder %s368_s15, 1 }
   0xd   : > { %p70_p5 = por %p69_p1, %p68_p0  ;;  %p106_p6 = scmp.eq.s32.totalorder %s369_s16, 1 }
   0xe   : > { %p675_p7 = por %p669_p3, %p74_p2  ;;  %p679_p8 = por %p100_p4, %p68_p0 }
   0xf   : > { %p683_p9 = por %p106_p6, %p74_p2  ;;  %p370_p10 = scmp.ge.s32.totalorder %s607_s14, 1 }
  0x10   : > { %p113_p11 = scmp.lt.s32.totalorder %s607_s14, 3  ;;  %p428_p1 = scmp.lt.s32.totalorder %s607_s14, 2 }
  0x11   : > { %s816_s21 = scalar_select %p683_p9, 1, 0 }
  0x12   : > { %p690_p13 = pnand %p370_p10, %p113_p11  ;;  %s135_s23 = sand.u32 1, %s595_s11  }
  0x13   : > { %p698_p2 = pnand %p428_p1, %p70_p5  ;;  %s31_s25 = sadd.s32 1, %s603_s13 }
  0x14   : > { %p415_p0 = pneg %p690_p13  ;;  %s373_s26 = sshll.u32 %s135_s23, 3 }
  0x15   : > { %p33_p6 = scmp.ge.s32.totalorder %s31_s25, 2  ;;  %s609_s27 = smov [#allocation2]  }
  0x16   : > { %p416_p4 = pnand %p415_p0, %p669_p3  ;;  %s819_s0 = sld [smem:[#allocation11_spill]] }
  0x17   : > { %s828_s25 = smov (%p33_p6, %s31_s25), 0  ;;  %s404_s30 = sshll.u32 %s603_s13, 7 }
  0x18   : > { %s56_s3 = ssub.s32 %s603_s13, %s828_s25  ;;  %s146_s6 = scalar_lea.hbm %s810_s1, %s404_s30 }
  0x19   : > { %p59_p5 = scmp.eq.s32.totalorder %s56_s3, 0  ;;  %s139_s7 = scalar_lea.vmem [#allocation6], %s373_s26 }
  0x1a   : > { %s147_s8 = sshll.u32 %s139_s7, 4  ;;  %s136_s16 = scalar_lea.sflag [#allocation3], %s135_s23  ;;  %s148_s8 = int_to_ptr.vmem [resolvable:$true] %s147_s8 }
  0x1b   : > { %s719_s15 = scalar_select %p59_p5, %s595_s11, %s61_s17  }
  0x1c   : > { %418 = dma.hbm_to_smem (!%p416_p4), %s819_s0, 16, %s609_s27, [#allocation5]  }
  0x1d   : > { %p497_p10 = pneg %p698_p2  ;;  %s508_s27 = scalar_lea.vmem %s148_s8, 128 }
  0x1e   : > { %p509_p11 = scmp.ne.s32.totalorder %s148_s8, %s508_s27  ;;  %s610_s28 = smov [#allocation6]  }
  0x1f   : > { %s513_s29 = sshll.u32 %s610_s28, 4  ;;  %s514_s29 = int_to_ptr.vmem [resolvable:$false] %s513_s29 }
  0x20   : > { %p511_p1 = pnand %p509_p11, %p497_p10  ;;  %s515_s0 = scalar_lea.vmem %s514_s29, 256 }
  0x21   : > { %p516_p4 = scmp.lt.s32.totalorder %s148_s8, %s514_s29  ;;  %p517_p6 = scmp.lt.s32.totalorder %s515_s0, %s508_s27 }
  0x22   : > { %p512_p0 = pneg %p511_p1 }
  0x23   : > { %p518_p12 = por %p517_p6, %p516_p4 }
  0x25   : > { %p519_p9 = pnand %p518_p12, %p512_p0 }
  0x27   : > { %522 = shalt.err (!%p519_p9)
}
  0x28   : > { %s611_s26 = smov 32   ;;  %s612_s17 = smov 2  }
  0x29   : > { %422 = dma.hbm_to_vmem [thread:$0]  (!%p698_p2), %s146_s6, 128, %s148_s8, %s136_s16, %s611_s26, %s611_s26, %s612_s17  }
  0x2a   : > { %159 = sbr.rel (%p690_p13) target bundleno = 92 (0x5c), region = 28 }
  0x2f   : > { %574 = dma.done.wait (%p669_p3), [#allocation5], 16  }
  0x30   : > { %576 = vsyncadd (%p669_p3), [#allocation5], 4294967280  ;;  %s732_s0 = sand.u32 1, %s591_s10  }
  0x31   : > { %s378_s23 = sshll.u32 %s732_s0, 3  ;;  %s166_s30 = scalar_lea.sflag [#allocation3], %s732_s0 }
  0x32   : > { %s736_s3 = scalar_lea.vmem [#allocation6], %s378_s23 }
  0x33   : > { %578 = dma.done.wait (%p675_p7), %s166_s30, 128  }
  0x34   : > { %580 = vsyncadd (%p675_p7), %s166_s30, 4294967168 }
  0x35   : > { %174 = sfence }
  0x36   : > { %s191_s22 = sld [smem:[#allocation2]]  ;;  %v192_v0 = vld [vmem:[%s736_s3] sm:$0x3]  ;;  %v380_v1 = vld [vmem:[%s736_s3 + $0x2] sm:$0x3]  ;;  %s405_s16 = smul.u32 6, %s732_s0 }
  0x37   : > { %s379_s18 = sld [smem:[#allocation2 + $0x1]]  ;;  %v382_v3 = vld [vmem:[%s736_s3 + $0x4] sm:$0x3]  ;;  %v384_v6 = vld [vmem:[%s736_s3 + $0x6] sm:$0x3]  ;;  %s406_s23 = smul.u32 96, %s599_s12 }
  0x38   : > { %s381_s24 = sld [smem:[#allocation2 + $0x2]]  ;;  %v215_v9 = vld [vmem:[%s736_s3] sm:$0x3]  ;;  %v387_v12 = vld [vmem:[%s736_s3 + $0x2] sm:$0x3]  ;;  %s190_s26 = scalar_lea.vmem [#allocation7], %s405_s16 }
  0x39   : > { %s383_s4 = sld [smem:[#allocation2 + $0x3]]  ;;  %v389_v16 = vld [vmem:[%s736_s3 + $0x4] sm:$0x3]  ;;  %v391_v19 = vld [vmem:[%s736_s3 + $0x6] sm:$0x3]  ;;  %s271_s17 = sshll.u32 %s190_s26, 4  ;;  %s756_s17 = int_to_ptr.vmem [resolvable:$true] %s271_s17 }
  0x3a   : > { %s385_s5 = sld [smem:[#allocation2 + $0x4]]  ;;  %v236_v23 = vld [vmem:[%s736_s3] sm:$0x3]  ;;  %v395_v26 = vld [vmem:[%s736_s3 + $0x2] sm:$0x3]  ;;  %s613_s12 = smov [#allocation7]  }
  0x3b   : > { %s386_s6 = sld [smem:[#allocation2 + $0x5]]  ;;  %v397_v31 = vld [vmem:[%s736_s3 + $0x4] sm:$0x3]  ;;  %v399_v34 = vld [vmem:[%s736_s3 + $0x6] sm:$0x3] }
  0x3c   : > { %v193_v2 = vstv %s191_s22  ;;  %s388_s19 = sld [smem:[#allocation2 + $0x6]]  ;;  %s761_s22 = scalar_lea.hbm %s811_s2, %s406_s23 }
  0x3d   : > { %v194_v4 = vmul.f32 %v193_v2, %v192_v0  ;;  %v198_v5 = vstv %s379_s18  ;;  %s390_s7 = sld [smem:[#allocation2 + $0x7]]  ;;  %s257_s18 = scalar_lea.sflag [#allocation4], %s732_s0 }
  0x3e   : > { %v199_v7 = vmul.f32 %v380_v1, %v198_v5  ;;  %v204_v8 = vstv %s381_s24  ;;  %s393_s8 = sld [smem:[#allocation2 + $0x8]]  ;;  %s523_s24 = scalar_lea.vmem %s756_s17, 96 }
  0x3f   : > { %v205_v10 = vmul.f32 %v382_v3, %v204_v8  ;;  %v210_v11 = vstv %s383_s4  ;;  %s394_s27 = sld [smem:[#allocation2 + $0x9]]  ;;  %p524_p3 = scmp.ne.s32.totalorder %s756_s17, %s523_s24 }
  0x40   : > { %v200_v13 = vadd.f32 %v199_v7, %v194_v4  ;;  %v211_v14 = vmul.f32 %v384_v6, %v210_v11  ;;  %v216_v15 = vstv %s385_s5  ;;  %s396_s28 = sld [smem:[#allocation2 + $0xa]]  ;;  %s527_s4 = sshll.u32 %s613_s12, 4  ;;  %s528_s4 = int_to_ptr.vmem [resolvable:$false] %s527_s4 }
  0x41   : > { %v217_v17 = vmul.f32 %v216_v15, %v215_v9  ;;  %v220_v18 = vstv %s386_s6  ;;  %s398_s29 = sld [smem:[#allocation2 + $0xb]]  ;;  %p525_p7 = pnand %p524_p3, %p679_p8 }
  0x42   : > { %v206_v20 = vadd.f32 %v205_v10, %v200_v13  ;;  %v221_v21 = vmul.f32 %v387_v12, %v220_v18  ;;  %v225_v22 = vstv %s388_s19  ;;  %s529_s5 = scalar_lea.vmem %s528_s4, 192  ;;  %p530_p12 = scmp.lt.s32.totalorder %s756_s17, %s528_s4 }
  0x43   : > { %v226_v24 = vmul.f32 %v389_v16, %v225_v22  ;;  %v230_v25 = vstv %s390_s7  ;;  %p526_p9 = pneg %p525_p7  ;;  %p531_p13 = scmp.lt.s32.totalorder %s529_s5, %s523_s24 }
  0x44   : > { %v212_v27 = vadd.f32 %v211_v14, %v206_v20  ;;  %v222_v28 = vadd.f32 %v221_v21, %v217_v17  ;;  %v231_v29 = vmul.f32 %v391_v19, %v230_v25  ;;  %v237_v30 = vstv %s393_s8 }
  0x45   : > { %v238_v32 = vmul.f32 %v237_v30, %v236_v23  ;;  %v241_v33 = vstv %s394_s27  ;;  %p532_p2 = por %p531_p13, %p530_p12 }
  0x46   : > { %213 = vst [vmem:[%s190_s26] sm:$0x3] %v212_v27  ;;  %v227_v35 = vadd.f32 %v226_v24, %v222_v28  ;;  %v242_v36 = vmul.f32 %v395_v26, %v241_v33  ;;  %v246_v37 = vstv %s396_s28 }
  0x47   : > { %v247_v38 = vmul.f32 %v397_v31, %v246_v37  ;;  %v251_v39 = vstv %s398_s29  ;;  %p533_p5 = pnand %p532_p2, %p526_p9 }
  0x48   : > { %v232_v40 = vadd.f32 %v231_v29, %v227_v35  ;;  %v243_v41 = vadd.f32 %v242_v36, %v238_v32  ;;  %v252_v42 = vmul.f32 %v399_v34, %v251_v39 }
  0x4a   : > { %392 = vst [vmem:[%s190_s26 + $0x2] sm:$0x3] %v232_v40  ;;  %v248_v43 = vadd.f32 %v247_v38, %v243_v41 }
  0x4c   : > { %v253_v44 = vadd.f32 %v252_v42, %v248_v43 }
  0x4e   : > { %400 = vst [vmem:[%s190_s26 + $0x4] sm:$0x3] %v253_v44 }
  0x4f   : > { %536 = shalt.err (!%p533_p5)
}
  0x50   : > { %s537_s6 = scalar_lea.hbm %s761_s22, 96  ;;  %s541_s8 = scalar_lea.hbm %s811_s2, 192 }
  0x51   : > { %p538_p10 = scmp.ne.s32.totalorder %s761_s22, %s537_s6  ;;  %p542_p0 = scmp.lt.s32.totalorder %s761_s22, %s811_s2 }
  0x52   : > { %p543_p4 = scmp.lt.s32.totalorder %s541_s8, %s537_s6 }
  0x53   : > { %p539_p11 = pnand %p538_p10, %p679_p8 }
  0x54   : > { %p544_p6 = por %p543_p4, %p542_p0 }
  0x55   : > { %p540_p1 = pneg %p539_p11 }
  0x57   : > { %p545_p3 = pnand %p544_p6, %p540_p1 }
  0x59   : > { %548 = shalt.err (!%p545_p3)
}
  0x5a   : > { %s614_s28 = smov 32   ;;  %s615_s29 = smov 2  }
  0x5b   : > { %413 = dma.vmem_to_hbm [thread:$0]  (%p679_p8), %s756_s17, 96, %s761_s22, %s257_s18, %s614_s28, %s614_s28, %s615_s29  }
  0x5c PF: > { %s286_s26 = sand.u32 1, %s587_s9   ;;  %p820_p7 = scmp.ne.s32.totalorder %s816_s21, 0 }
  0x5d   : > { %p821_p9 = scmp.ge.s32.totalorder %s607_s14, 2  ;;  %s287_s23 = scalar_lea.sflag [#allocation4], %s286_s26 }
  0x5f   : > { %p424_p12 = pnand %p821_p9, %p820_p7 }
  0x61   : > { %p425_p13 = pneg %p424_p12 }
  0x63   : > { %582 = dma.done.wait (%p425_p13), %s287_s23, 96  }
  0x64   : > { %584 = vsyncadd (%p425_p13), %s287_s23, 4294967200  ;;  %s19_s14 = sadd.s32 1, %s607_s14   ;;  %s822_s9 = smov %s591_s10 }
  0x65   : > { %p16_p2 = scmp.ge.s32.totalorder %s19_s14, 4   ;;  %s823_s10 = smov %s595_s11 }
  0x66   : > { %s824_s11 = smov %s719_s15  ;;  %s825_s12 = smov %s603_s13 }
  0x67   : > { %s826_s13 = smov %s828_s25  ;;  %18 = sbr.rel (!%p16_p2) target bundleno = 9 (0x9), region = 83 }
  0x6c   :  { %292 = vsyncpa [#allocation3], 1 }
  0x6d   :  { %294 = vsyncpa [#allocation3 + $0x1], 1 }
  0x6e   :  { %295 = vsyncpa [#allocation4], 1 }
  0x6f   :  { %297 = vsyncpa [#allocation4 + $0x1], 1 }
  0x70   :  { %298 = vsyncpa [#allocation5], 1 }
  0x71   :  { %300 = vsyncpa [#allocation5 + $0x1], 1 }

</bundles_post_ra>
